<compile_context>
chip_gen: v7x
topology: tpu7x:2x2x1
jax: 0.10.0
libtpu: 0.0.40
codegen_flags: <defaults>
</compile_context>

<pallas_src>
import jax
import jax.numpy as jnp
from jax.experimental import pallas as pl
from jax.experimental.pallas import tpu as pltpu

EPS = 1e-5  # PyTorch nn.LayerNorm default


# ---------------------------------------------------------------------------
# Tiling / budgeting helpers
# ---------------------------------------------------------------------------
def _round_up(x, m):
    return ((x + m - 1) // m) * m


def _sublane_multiple(dtype):
    # Packed sublane tiling: f32 -> (8,128), bf16 -> (16,128), 8-bit -> (32,128).
    itemsize = jnp.dtype(dtype).itemsize
    return max(8, 32 // max(itemsize, 1))


def _pick_row_tile(R, dtype, cap=256):
    """Row tile: a multiple of the packed sublane count, capped at `cap`
    (MXU-M aligned; safe on v7x's 64 MiB-per-TC VMEM). Ragged R is handled by
    pl.cdiv + a padded last block instead of falling back to tiny or full-R
    tiles."""
    m = _sublane_multiple(dtype)
    return max(m, min(cap, _round_up(R, m)))


def _vmem_limit_bytes(est_bytes):
    # Explicit scoped-VMEM budget: 2x the estimated working set with a 32 MiB
    # floor (v5e default is only 16 MiB) and a 96 MiB ceiling.
    return int(min(max(2 * est_bytes, 32 * 1024 * 1024), 96 * 1024 * 1024))


# ---------------------------------------------------------------------------
# Fused kernel: Linear(LayerNorm(x)) with gamma/beta pre-folded into W/b.
# Grid = (row tiles, D_out tiles); D_out is the inner ("arbitrary") axis.
#   x_ref : (TR, D)      row tile (block index constant over n -> fetched once)
#   w_ref : (D, TN)      folded-weight slab (bf16 for the MXU)
#   b_ref : (1, TN)      folded-bias slab
#   o_ref : (TR, TN)
#   y_ref : (TR, D)      VMEM scratch caching the normalized rows (MXU dtype)
# ---------------------------------------------------------------------------
def _prenorm_linear_kernel(x_ref, w_ref, b_ref, o_ref, y_ref):
    @pl.when(pl.program_id(1) == 0)
    def _():
        x = x_ref[...].astype(jnp.float32)                      # (TR, D)
        inv_d = 1.0 / x.shape[-1]
        mean = jnp.sum(x, axis=-1, keepdims=True) * inv_d
        xc = x - mean                                           # two-pass stats
        var = jnp.sum(xc * xc, axis=-1, keepdims=True) * inv_d
        y_ref[...] = (xc * jax.lax.rsqrt(var + EPS)).astype(y_ref.dtype)

    acc = jnp.dot(y_ref[...], w_ref[...], preferred_element_type=jnp.float32)
    o_ref[...] = (acc + b_ref[...].astype(jnp.float32)).astype(o_ref.dtype)


def fold_prenorm_linear_params(gamma, beta, w, b, *, mxu_dtype=jnp.bfloat16):
    """Fold LayerNorm affine params into the Linear weight/bias:
        (y * gamma + beta) @ W + b == y @ (gamma[:,None] * W) + (beta @ W + b)
    Do this once per weight and cache the result (under jit it is hoisted)."""
    w32 = w.astype(jnp.float32)
    w_folded = gamma.astype(jnp.float32)[:, None] * w32
    w_folded = w_folded.astype(mxu_dtype if mxu_dtype is not None else w.dtype)
    b_folded = beta.astype(jnp.float32) @ w32 + b.astype(jnp.float32)
    return w_folded, b_folded


def prenorm_linear_folded(x, w_folded, b_folded, *, row_tile=None, col_tile=None,
                          out_dtype=None):
    """Fused PreNorm(Linear) forward with pre-folded parameters."""
    orig_shape = x.shape
    D = orig_shape[-1]
    D_out = w_folded.shape[-1]
    out_dtype = x.dtype if out_dtype is None else out_dtype

    x2d = x.reshape(-1, D)
    R = x2d.shape[0]
    TR = row_tile if row_tile is not None else _pick_row_tile(R, x.dtype)

    # Lane-dense output: pad D_out to a multiple of the N tile (>=128) with
    # zero weight/bias columns (sliced away below) -> unmasked full-lane stores.
    D_out_p = _round_up(D_out, 128)
    TN = col_tile if col_tile is not None else (256 if D_out_p % 256 == 0 else 128)
    D_out_p = _round_up(D_out_p, TN)
    if D_out_p != D_out:
        w_folded = jnp.pad(w_folded, ((0, 0), (0, D_out_p - D_out)))
        b_folded = jnp.pad(b_folded, ((0, D_out_p - D_out),))
    b2d = b_folded.reshape(1, D_out_p)

    x_b = jnp.dtype(x.dtype).itemsize
    w_b = jnp.dtype(w_folded.dtype).itemsize
    o_b = jnp.dtype(out_dtype).itemsize
    est = (2 * TR * D * x_b            # x tile, double-buffered
           + 2 * D * TN * w_b          # W slab, double-buffered
           + 2 * TN * 4                # bias slab
           + 2 * TR * TN * o_b         # out tile, double-buffered
           + TR * D * w_b              # LN scratch
           + 4 * TR * D * 4)           # f32 temporaries headroom

    cost = pl.CostEstimate(
        flops=2 * R * D * D_out_p,
        transcendentals=R,             # one rsqrt per row
        bytes_accessed=(R * D * x_b + D * D_out_p * w_b
                        + D_out_p * 4 + R * D_out_p * o_b))

    grid = (pl.cdiv(R, TR), D_out_p // TN)

    out2d = pl.pallas_call(
        _prenorm_linear_kernel,
        out_shape=jax.ShapeDtypeStruct((R, D_out_p), out_dtype),
        grid=grid,
        in_specs=[
            pl.BlockSpec((TR, D), lambda r, n: (r, 0)),   # x (constant over n)
            pl.BlockSpec((D, TN), lambda r, n: (0, n)),   # W slab
            pl.BlockSpec((1, TN), lambda r, n: (0, n)),   # bias slab
        ],
        out_specs=pl.BlockSpec((TR, TN), lambda r, n: (r, n)),
        scratch_shapes=[pltpu.VMEM((TR, D), w_folded.dtype)],
        compiler_params=pltpu.CompilerParams(
            dimension_semantics=("parallel", "arbitrary"),
            vmem_limit_bytes=_vmem_limit_bytes(est)),
        cost_estimate=cost,
    )(x2d, w_folded, b2d)

    if D_out_p != D_out:
        out2d = out2d[:, :D_out]
    return out2d.reshape(*orig_shape[:-1], D_out)


def prenorm_linear(x, gamma, beta, w, b, *, mxu_dtype=jnp.bfloat16, **kwargs):
    """Convenience wrapper: folds gamma/beta then runs the fused kernel.
    For repeated eager calls, cache fold_prenorm_linear_params() instead."""
    w_f, b_f = fold_prenorm_linear_params(gamma, beta, w, b, mxu_dtype=mxu_dtype)
    return prenorm_linear_folded(x, w_f, b_f, **kwargs)


# ---------------------------------------------------------------------------
# Standalone tiled LayerNorm kernel (for PreNorm with an arbitrary fn).
# ---------------------------------------------------------------------------
def _layernorm_kernel(x_ref, gamma_ref, beta_ref, o_ref):
    x = x_ref[...].astype(jnp.float32)
    inv_d = 1.0 / x.shape[-1]
    mean = jnp.sum(x, axis=-1, keepdims=True) * inv_d
    xc = x - mean
    var = jnp.sum(xc * xc, axis=-1, keepdims=True) * inv_d
    y = xc * jax.lax.rsqrt(var + EPS)
    y = y * gamma_ref[...].astype(jnp.float32) + beta_ref[...].astype(jnp.float32)
    o_ref[...] = y.astype(o_ref.dtype)


def layernorm(x, gamma, beta, *, row_tile=None):
    orig_shape = x.shape
    D = orig_shape[-1]
    x2d = x.reshape(-1, D)
    R = x2d.shape[0]
    TR = row_tile if row_tile is not None else _pick_row_tile(R, x.dtype)
    x_b = jnp.dtype(x.dtype).itemsize
    est = 4 * TR * D * x_b + 4 * D * 4 + 4 * TR * D * 4
    out2d = pl.pallas_call(
        _layernorm_kernel,
        out_shape=jax.ShapeDtypeStruct((R, D), x.dtype),
        grid=(pl.cdiv(R, TR),),
        in_specs=[
            pl.BlockSpec((TR, D), lambda i: (i, 0)),
            pl.BlockSpec((1, D), lambda i: (0, 0)),
            pl.BlockSpec((1, D), lambda i: (0, 0)),
        ],
        out_specs=pl.BlockSpec((TR, D), lambda i: (i, 0)),
        compiler_params=pltpu.CompilerParams(
            dimension_semantics=("parallel",),
            vmem_limit_bytes=_vmem_limit_bytes(est)),
    )(x2d, gamma.reshape(1, D), beta.reshape(1, D))
    return out2d.reshape(orig_shape)


def prenorm_forward(x, gamma, beta, fn, **kwargs):
    """Generic PreNorm: fn(LayerNorm(x), **kwargs).

    Use prenorm_linear() when fn is a Linear layer to get the fully fused kernel.
    """
    # TODO(synk): an arbitrary `fn` module cannot be fused into the Pallas
    # kernel; this path only fuses the LayerNorm and leaves fn to the caller.
    return fn(layernorm(x, gamma, beta), **kwargs)


if __name__ == "__main__":
    B, S, D = 2, 8, 32
    key = jax.random.PRNGKey(0)
    kx, kg, kb0, kw, kb, kw2, kb2 = jax.random.split(key, 7)

    x = jax.random.normal(kx, (B, S, D), dtype=jnp.float32)
    # Non-trivial LayerNorm affine params to exercise the gamma/beta folding.
    gamma = 1.0 + 0.1 * jax.random.normal(kg, (D,), dtype=jnp.float32)
    beta = 0.1 * jax.random.normal(kb0, (D,), dtype=jnp.float32)

    # fn = Linear(D -> D)
    w = jax.random.normal(kw, (D, D), dtype=jnp.float32) * 0.05
    b = jax.random.normal(kb, (D,), dtype=jnp.float32) * 0.05

    def ref_norm(v):
        mean = jnp.mean(v, axis=-1, keepdims=True)
        var = jnp.mean((v - mean) ** 2, axis=-1, keepdims=True)
        return (v - mean) / jnp.sqrt(var + EPS) * gamma + beta

    # Fused PreNorm(Linear) forward (D_out=32 is padded to 128 lanes internally).
    out = prenorm_linear(x, gamma, beta, w, b)
    jax.block_until_ready(out)
    ref_out = ref_norm(x) @ w + b
    assert out.shape == (B, S, D)
    # Fused path feeds the MXU bf16 operands (f32 accumulation) -> looser tol.
    assert jnp.allclose(out, ref_out, atol=2e-2, rtol=2e-2)

    # A wider fn (D -> 256) with col_tile=128 exercises >1 N tile and the
    # LN-scratch reuse across the inner grid axis.
    w2 = jax.random.normal(kw2, (D, 256), dtype=jnp.float32) * 0.05
    b2 = jax.random.normal(kb2, (256,), dtype=jnp.float32) * 0.05
    out2 = prenorm_linear(x, gamma, beta, w2, b2, col_tile=128)
    jax.block_until_ready(out2)
    ref_out2 = ref_norm(x) @ w2 + b2
    assert out2.shape == (B, S, 256)
    assert jnp.allclose(out2, ref_out2, atol=2e-2, rtol=2e-2)

    # Standalone LayerNorm path (generic PreNorm fn): f32 math, tight tolerance.
    normed = layernorm(x, gamma, beta)
    jax.block_until_ready(normed)
    assert jnp.allclose(normed, ref_norm(x), atol=1e-4, rtol=1e-4)

    print("KERNEL_OK")
</pallas_src>

<mosaic_0001>
module attributes {stable_mosaic.version = 11 : i64} {
  func.func @_prenorm_linear_kernel(%arg0: i32, %arg1: i32, %arg2: memref<16x32xf32, #tpu.memory_space<vmem>>, %arg3: memref<32x128xbf16, #tpu.memory_space<vmem>>, %arg4: memref<1x128xf32, #tpu.memory_space<vmem>>, %arg5: memref<16x128xf32, #tpu.memory_space<vmem>>, %arg6: memref<16x32xbf16, #tpu.memory_space<vmem>>) attributes {dimension_semantics = [#tpu.dimension_semantics<parallel>, #tpu.dimension_semantics<arbitrary>], iteration_bounds = array<i64: 1, 1>, scalar_prefetch = 0 : i64, scratch_operands = 1 : i64, tpu.core_type = #tpu.core_type<tc>, window_params = [{transform_indices = @transform_0, window_bounds = array<i64: 16, 32>}, {transform_indices = @transform_1, window_bounds = array<i64: 32, 128>}, {transform_indices = @transform_2, window_bounds = array<i64: 1, 128>}, {transform_indices = @transform_3, window_bounds = array<i64: 16, 128>}]} {
    %c0_i32 = arith.constant 0 : i32
    %0 = arith.cmpi eq, %arg1, %c0_i32 : i32
    %1 = arith.extui %0 : i1 to i32
    %c0_i32_0 = arith.constant 0 : i32
    %2 = arith.cmpi ne, %1, %c0_i32_0 : i32
    scf.if %2 {
      %c0_8 = arith.constant 0 : index
      %c0_9 = arith.constant 0 : index
      %10 = vector.load %arg2[%c0_8, %c0_9] : memref<16x32xf32, #tpu.memory_space<vmem>>, vector<16x32xf32>
      %cst_10 = arith.constant dense<0.000000e+00> : vector<16xf32>
      %11 = vector.multi_reduction <add>, %10, %cst_10 [1] : vector<16x32xf32> to vector<16xf32>
      %12 = vector.shape_cast %11 : vector<16xf32> to vector<16x1xf32>
      %cst_11 = arith.constant 3.125000e-02 : f32
      %13 = vector.broadcast %cst_11 : f32 to vector<16x1xf32>
      %14 = arith.mulf %12, %13 : vector<16x1xf32>
      %15 = vector.broadcast %14 : vector<16x1xf32> to vector<16x32xf32>
      %16 = arith.subf %10, %15 : vector<16x32xf32>
      %17 = arith.mulf %16, %16 : vector<16x32xf32>
      %cst_12 = arith.constant dense<0.000000e+00> : vector<16xf32>
      %18 = vector.multi_reduction <add>, %17, %cst_12 [1] : vector<16x32xf32> to vector<16xf32>
      %19 = vector.shape_cast %18 : vector<16xf32> to vector<16x1xf32>
      %cst_13 = arith.constant 3.125000e-02 : f32
      %20 = vector.broadcast %cst_13 : f32 to vector<16x1xf32>
      %21 = arith.mulf %19, %20 : vector<16x1xf32>
      %cst_14 = arith.constant 9.99999974E-6 : f32
      %22 = vector.broadcast %cst_14 : f32 to vector<16x1xf32>
      %23 = arith.addf %21, %22 : vector<16x1xf32>
      %24 = math.rsqrt %23 : vector<16x1xf32>
      %25 = vector.broadcast %24 : vector<16x1xf32> to vector<16x32xf32>
      %26 = arith.mulf %16, %25 : vector<16x32xf32>
      %27 = arith.truncf %26 : vector<16x32xf32> to vector<16x32xbf16>
      %c0_15 = arith.constant 0 : index
      %c0_16 = arith.constant 0 : index
      %28 = vector.load %arg6[%c0_15, %c0_16] : memref<16x32xbf16, #tpu.memory_space<vmem>>, vector<16x32xbf16>
      tpu.vector_store %arg6[%c0_15, %c0_16], %27 {strides = array<i32>} : memref<16x32xbf16, #tpu.memory_space<vmem>>, vector<16x32xbf16>,
    } else {
    }
    %c0 = arith.constant 0 : index
    %c0_1 = arith.constant 0 : index
    %3 = vector.load %arg6[%c0, %c0_1] : memref<16x32xbf16, #tpu.memory_space<vmem>>, vector<16x32xbf16>
    %c0_2 = arith.constant 0 : index
    %c0_3 = arith.constant 0 : index
    %4 = vector.load %arg3[%c0_2, %c0_3] : memref<32x128xbf16, #tpu.memory_space<vmem>>, vector<32x128xbf16>
    %cst = arith.constant dense<0.000000e+00> : vector<16x128xf32>
    %5 = tpu.matmul %3, %4, %cst {dimension_numbers = #tpu.dot_dimension_numbers<[1], [0], [0], [1], [0, 0, 1, 1], [], []>} : vector<16x32xbf16>, vector<32x128xbf16>, vector<16x128xf32> -> vector<16x128xf32>
    %c0_4 = arith.constant 0 : index
    %c0_5 = arith.constant 0 : index
    %6 = vector.load %arg4[%c0_4, %c0_5] : memref<1x128xf32, #tpu.memory_space<vmem>>, vector<1x128xf32>
    %7 = vector.broadcast %6 : vector<1x128xf32> to vector<16x128xf32>
    %8 = arith.addf %5, %7 : vector<16x128xf32>
    %c0_6 = arith.constant 0 : index
    %c0_7 = arith.constant 0 : index
    %9 = vector.load %arg5[%c0_6, %c0_7] : memref<16x128xf32, #tpu.memory_space<vmem>>, vector<16x128xf32>
    tpu.vector_store %arg5[%c0_6, %c0_7], %8 {strides = array<i32>} : memref<16x128xf32, #tpu.memory_space<vmem>>, vector<16x128xf32>,
    return
  }
  func.func @transform_0(%arg0: i32, %arg1: i32) -> (i32, i32) {
    %c0_i32 = arith.constant 0 : i32
    %c0_i32_0 = arith.constant 0 : i32
    return %arg0, %c0_i32 : i32, i32
  }
  func.func @transform_1(%arg0: i32, %arg1: i32) -> (i32, i32) {
    %c0_i32 = arith.constant 0 : i32
    %c0_i32_0 = arith.constant 0 : i32
    return %c0_i32, %arg1 : i32, i32
  }
  func.func @transform_2(%arg0: i32, %arg1: i32) -> (i32, i32) {
    %c0_i32 = arith.constant 0 : i32
    %c0_i32_0 = arith.constant 0 : i32
    return %c0_i32, %arg1 : i32, i32
  }
  func.func @transform_3(%arg0: i32, %arg1: i32) -> (i32, i32) {
    %c0_i32 = arith.constant 0 : i32
    return %arg0, %arg1 : i32, i32
  }
}

</mosaic_0001>

<bundles_post_ra>
// kernel: tpu_custom_call.1
= control target key start
LH: loop header
LB: loop body
LE: loop exit
PB: predicated region body
PF: predicated region fallthrough
CT: control target
= control target key end

     0   :  { %8 = vsyncpa [#allocation4], 0  ;;  %s350_s0 = inlined_call_operand.hbm [shape: f32[16,32], index: 0, kind: input, shape index: {}]   ;;  %s351_s1 = inlined_call_operand.hbm [shape: bf16[32,128], index: 1, kind: input, shape index: {}]   ;;  %s352_s2 = inlined_call_operand.vmem [shape: f32[1,128], index: 2, kind: input, shape index: {}]   ;;  %s353_s3 = inlined_call_operand.hbm [shape: f32[16,128], index: 3, kind: output, shape index: {}]  }
   0x1   :  { %9 = vsyncpa [#allocation7], 0 }
   0x2   :  { %10 = vsyncpa [#allocation5], 0  ;;  %s270_s12 = smov [#allocation3]   ;;  %s198_s16 = scalar_lea.hbm %s350_s0, 256 }
   0x3   :  { %s16_s13 = sshll.u32 %s270_s12, 4  ;;  %p199_p0 = scmp.ne.s32.totalorder %s350_s0, %s198_s16  ;;  %s17_s13 = int_to_ptr.vmem [resolvable:$true] %s16_s13 }
   0x4   :  { %p202_p1 = scmp.lt.u32.totalorder %s198_s16, %s350_s0 }
   0x6   :  { %p204_p2 = pnand %p202_p1, %p199_p0 }
   0x8   :  { %207 = shalt.err (!%p204_p2)
}
   0x9   :  { %s208_s21 = scalar_lea.vmem %s17_s13, 256  ;;  %p213_p4 = scmp.lt.s32.totalorder %s17_s13, %s17_s13 }
   0xa   :  { %p209_p3 = scmp.ne.s32.totalorder %s17_s13, %s208_s21  ;;  %p214_p5 = scmp.lt.s32.totalorder %s208_s21, %s208_s21 }
   0xc   :  { %p215_p6 = por %p214_p5, %p213_p4 }
   0xe   :  { %p216_p7 = pnand %p215_p6, %p209_p3 }
  0x10   :  { %219 = shalt.err (!%p216_p7)
}
  0x11   :  { %s271_s22 = smov 128   ;;  %s272_s23 = smov 8  }
  0x12   :  { %22 = dma.hbm_to_vmem [thread:$0]  %s350_s0, 256, %s17_s13, [#allocation4], %s271_s22, %s271_s22, %s272_s23  }
  0x13   :  { %s273_s26 = smov [#allocation6]   ;;  %s220_s30 = scalar_lea.hbm %s351_s1, 256 }
  0x14   :  { %s28_s27 = sshll.u32 %s273_s26, 4  ;;  %p221_p8 = scmp.ne.s32.totalorder %s351_s1, %s220_s30  ;;  %s29_s27 = int_to_ptr.vmem [resolvable:$true] %s28_s27 }
  0x15   :  { %p224_p9 = scmp.lt.u32.totalorder %s220_s30, %s351_s1 }
  0x17   :  { %p226_p10 = pnand %p224_p9, %p221_p8 }
  0x19   :  { %229 = shalt.err (!%p226_p10)
}
  0x1a   :  { %s230_s8 = scalar_lea.vmem %s29_s27, 256  ;;  %p235_p12 = scmp.lt.s32.totalorder %s29_s27, %s29_s27 }
  0x1b   :  { %p231_p11 = scmp.ne.s32.totalorder %s29_s27, %s230_s8  ;;  %p236_p13 = scmp.lt.s32.totalorder %s230_s8, %s230_s8 }
  0x1d   :  { %p237_p0 = por %p236_p13, %p235_p12 }
  0x1f   :  { %p238_p1 = pnand %p237_p0, %p231_p11 }
  0x21   :  { %241 = shalt.err (!%p238_p1)
}
  0x22   :  { %s274_s0 = smov 64   ;;  %s275_s9 = smov 4  }
  0x23   :  { %34 = dma.hbm_to_vmem [thread:$0]  %s351_s1, 256, %s29_s27, [#allocation7], %s274_s0, %s274_s0, %s275_s9  }
  0x24   :  { %264 = dma.done.wait [#allocation4], 256  }
  0x25   :  { %265 = vsyncadd [#allocation4], 4294967040 }
  0x26   :  { %266 = dma.done.wait [#allocation7], 256  }
  0x27   :  { %267 = vsyncadd [#allocation7], 4294967040  ;;  %vm50_vm0 = vcmask 261120   ;;  %v48_v0 = vld [vmem:[#allocation3] sm:$0xff]  ;;  %v49_v1 = vld [vmem:[#allocation3 + $0x8] sm:$0xff]  ;;  %v276_v15 = vmov 0.0  }
  0x28   :  { %v51_v2 = vsel %vm50_vm0, %v48_v0, 0.0  ;;  %v54_v3 = vsel %vm50_vm0, %v49_v1, 0.0  ;;  %v192_v14 = vld [vmem:[#allocation6] sm:$0xff]   ;;  %175 = vmatprep.subr.bf16.mxu0 %v276_v15  ;;  %v193_v16 = vld [vmem:[#allocation6 + $0x8] sm:$0xff]   ;;  %vm277_vm1 = vmmov 0   ;;  %s278_s13 = smov [#allocation8]  }
  0x29   :  { %52 = vadd.xlane.f32.xlu0 %v51_v2  ;;  %176 = vmatpush3.bf16.msra.mxu0 %v192_v14  ;;  %v168_v29 = vld [vmem:[%s352_s2] ss:$0 sm:$0xff]  ;;  %s155_s14 = sshll.u32 %s278_s13, 4  ;;  %s156_s14 = int_to_ptr.vmem [resolvable:$true] %s155_s14 }
  0x2a   :  { %179 = vmatprep.mubr.msk.bf16.mxu0 %vm277_vm1, %v276_v15  ;;  %177 = vmatprep.subr.bf16.mxu0 %v276_v15  ;;  %s242_s15 = scalar_lea.vmem %s156_s14, 256  ;;  %p247_p3 = scmp.lt.s32.totalorder %s156_s14, %s156_s14 }
  0x2b   :  { %p243_p2 = scmp.ne.s32.totalorder %s156_s14, %s242_s15  ;;  %p248_p4 = scmp.lt.s32.totalorder %s242_s15, %s242_s15 }
  0x2d   :  { %55 = vadd.xlane.f32.xlu0 %v54_v3  ;;  %178 = vmatpush3.bf16.msra.mxu0 %v193_v16  ;;  %p249_p5 = por %p248_p4, %p247_p3 }
  0x2f   :  { %p250_p6 = pnand %p249_p5, %p243_p2 }
  0xb6   :  { %v53_v4 = vpop.xlane.xlu0 %52 }
  0xb7   :  { %v57_v5 = vmul.f32 0.03125, %v53_v4 }
  0xb9   :  { %v59_v6 = vsub.f32 %v48_v0, %v57_v5 }
  0xba   :  { %v56_v7 = vpop.xlane.xlu0 %55 }
  0xbb   :  { %v58_v8 = vmul.f32 0.03125, %v56_v7  ;;  %v61_v9 = vmul.f32 %v59_v6, %v59_v6 }
  0xbd   :  { %v60_v10 = vsub.f32 %v49_v1, %v58_v8  ;;  %v63_v11 = vsel %vm50_vm0, %v61_v9, 0.0 }
  0xbe   :  { %64 = vadd.xlane.f32.xlu1 %v63_v11 }
  0xbf   :  { %v62_v12 = vmul.f32 %v60_v10, %v60_v10 }
  0xc1   :  { %v66_v13 = vsel %vm50_vm0, %v62_v12, 0.0 }
  0xc2   :  { %67 = vadd.xlane.f32.xlu1 %v66_v13 }
 0x14b   :  { %v65_v17 = vpop.xlane.xlu1 %64 }
 0x14c   :  { %v69_v18 = vmul.f32 0.03125, %v65_v17 }
 0x14e   :  { %v71_v19 = vadd.f32 1e-05, %v69_v18 }
 0x14f   :  { %v68_v20 = vpop.xlane.xlu1 %67 }
 0x150   :  { %v70_v21 = vmul.f32 0.03125, %v68_v20  ;;  %194 = vrsqrt.f32 %v71_v19 }
 0x152   :  { %v72_v22 = vadd.f32 1e-05, %v70_v21 }
 0x154   :  { %196 = vrsqrt.f32 %v72_v22 }
 0x15a   :  { %v195_v23 = vpop.eup %194 }
 0x15b   :  { %v75_v25 = vmul.f32 %v195_v23, %v59_v6 }
 0x15e   :  { %v197_v24 = vpop.eup %196 }
 0x15f   :  { %v76_v26 = vmul.f32 %v197_v24, %v60_v10 }
 0x161   :  { %v77_v27 = vpack.c.bf16 %v76_v26, %v75_v25 }
 0x163   :  { %78 = vst.msk [vmem:[#allocation2] sm:$0xff] %vm50_vm0, %v77_v27 }
 0x16a   :  { %v79_v28 = vld [vmem:[#allocation2] sm:$0xff] }
 0x16b   :  { %180 = vmatmul.mubr.msk.bf16.vlgmr.msra.gmra.mrb[0].mxu0 %vm50_vm0, %v79_v28 }
 0x23e   :  { %v141_v30 = vpop.f32.mrb[0].mxu0 }
 0x23f   :  { %v142_v31 = vadd.f32 %v168_v29, %v141_v30  ;;  %v181_v32 = vpop.f32.mrb[1].mxu0 }
 0x240   :  { %v144_v33 = vpop.f32.mrb[2].mxu0 }
 0x241   :  { %148 = vst [vmem:[#allocation8] sm:$0xff] %v142_v31  ;;  %v145_v34 = vadd.f32 %v168_v29, %v144_v33  ;;  %v182_v35 = vpop.f32.mrb[3].mxu0 }
 0x243   :  { %149 = vst [vmem:[#allocation8 + $0x8] sm:$0xff] %v145_v34 }
 0x244   :  { %253 = shalt.err (!%p250_p6)
}
 0x245   :  { %s254_s17 = scalar_lea.hbm %s353_s3, 256 }
 0x246   :  { %p255_p7 = scmp.ne.s32.totalorder %s353_s3, %s254_s17  ;;  %p258_p8 = scmp.lt.u32.totalorder %s254_s17, %s353_s3 }
 0x248   :  { %p260_p9 = pnand %p258_p8, %p255_p7 }
 0x24a   :  { %263 = shalt.err (!%p260_p9)
}
 0x24b   :  { %161 = dma.vmem_to_hbm [thread:$0]  %s156_s14, 256, %s353_s3, [#allocation5], %s271_s22, %s271_s22, %s272_s23  }
 0x24c   :  { %268 = dma.done.wait [#allocation5], 256  }
 0x24d   :  { %269 = vsyncadd [#allocation5], 4294967040 }
 0x24e   :  { %165 = vsyncpa [#allocation4], 1 }
 0x24f   :  { %166 = vsyncpa [#allocation7], 1 }
 0x250   :  { %167 = vsyncpa [#allocation5], 1 }

</bundles_post_ra>
